<compile_context>
chip_gen: v7x
topology: tpu7x:2x2x1
jax: 0.10.0
libtpu: 0.0.40
codegen_flags: <defaults>
</compile_context>

<pallas_src>
import functools

import jax
import jax.numpy as jnp
from jax.experimental import pallas as pl
from jax.experimental.pallas import tpu as pltpu

KH = KW = 4
STRIDE = 2
PAD = 1
EPS = 1e-5
NEG_SLOPE = 0.2

LANE = 128
SUBLANE = 8


def _round_up(x, m):
    return ((x + m - 1) // m) * m


def _cdiv(a, b):
    return -(-a // b)


# --------------------------------------------------------------------------
# Kernel 1: conv-as-matmul (bf16 in, fp32 accumulate) + per-channel batch
# statistics. Grid = (n_par, n_inner); axis 0 is "parallel" (megacore-safe:
# each parallel slice owns its own stats block), axis 1 is "arbitrary" with
# the stats blocks resident across it.
# --------------------------------------------------------------------------
def _conv_stats_kernel(p_ref, w_ref, y_ref, sum_ref, sq_ref):
    i = pl.program_id(1)

    y = jnp.dot(p_ref[...], w_ref[...], preferred_element_type=jnp.float32)
    y_ref[...] = y.astype(y_ref.dtype)

    @pl.when(i == 0)
    def _init():
        sum_ref[...] = jnp.zeros_like(sum_ref)
        sq_ref[...] = jnp.zeros_like(sq_ref)

    # fp32 per-parallel-slice partial sums; accumulate directly into the
    # resident (8, Cout_p) output blocks (rows are identical; row 0 is used).
    sum_ref[...] += jnp.sum(y, axis=0, keepdims=True)
    sq_ref[...] += jnp.sum(y * y, axis=0, keepdims=True)


# --------------------------------------------------------------------------
# Kernel 2: folded BatchNorm affine + LeakyReLU(0.2), in place over conv_out.
# --------------------------------------------------------------------------
def _bn_lrelu_kernel(y_ref, scale_ref, bias_ref, o_ref):
    z = y_ref[...].astype(jnp.float32) * scale_ref[...] + bias_ref[...]
    z = jnp.where(z >= 0.0, z, NEG_SLOPE * z)
    o_ref[...] = z.astype(o_ref.dtype)


@functools.partial(jax.jit, static_argnames=("tm",))
def cnn_block_forward(x_nchw, weight_oihw, gamma, beta, *, tm=256):
    # tm=256 is the v7x-safe default; 512 also fits comfortably on v5e/v6e
    # with the 48 MiB scoped-VMEM limit below.
    N, Cin, H, W = x_nchw.shape
    Cout = weight_oihw.shape[0]
    Ho = (H + 2 * PAD - KH) // STRIDE + 1
    Wo = (W + 2 * PAD - KW) // STRIDE + 1
    M = N * Ho * Wo
    K = KH * KW * Cin

    # Lane-dense padded sizes (last dims multiples of 128).
    K_p = _round_up(K, LANE)
    Cout_p = _round_up(Cout, LANE)

    # Row tiling: pad M up to n_par * n_inner * tm_eff instead of asserting
    # divisibility; n_par=2 gives v7x's two TensorCores independent work.
    tm_eff = min(tm, _round_up(M, SUBLANE))
    total_tiles = _cdiv(M, tm_eff)
    n_par = 2 if total_tiles >= 2 else 1
    n_inner = _cdiv(total_tiles, n_par)
    M_p = n_par * n_inner * tm_eff

    # --- XLA glue: NCHW->NHWC, bf16 cast, reflect pad, im2col, zero pad ---
    x_nhwc = jnp.transpose(x_nchw, (0, 2, 3, 1)).astype(jnp.bfloat16)
    x_pad = jnp.pad(x_nhwc, ((0, 0), (PAD, PAD), (PAD, PAD), (0, 0)), mode="reflect")
    cols = []
    for ky in range(KH):
        for kx in range(KW):
            cols.append(
                jax.lax.slice(
                    x_pad,
                    (0, ky, kx, 0),
                    (N, ky + STRIDE * (Ho - 1) + 1, kx + STRIDE * (Wo - 1) + 1, Cin),
                    (1, STRIDE, STRIDE, 1),
                )
            )
    patches = jnp.stack(cols, axis=3).reshape(M, K)            # bf16, K order (ky,kx,c)
    patches = jnp.pad(patches, ((0, M_p - M), (0, K_p - K)))   # zero rows/cols

    # (Cout,Cin,KH,KW) -> (KH,KW,Cin,Cout) -> (K,Cout), matching patch K order.
    w_mat = jnp.transpose(weight_oihw, (2, 3, 1, 0)).reshape(K, Cout)
    w_mat = jnp.pad(w_mat, ((0, K_p - K), (0, Cout_p - Cout))).astype(jnp.bfloat16)

    cost = pl.CostEstimate(
        flops=2 * M_p * K_p * Cout_p,
        transcendentals=0,
        bytes_accessed=2 * (M_p * K_p + K_p * Cout_p + M_p * Cout_p)
        + 2 * 4 * n_par * SUBLANE * Cout_p,
    )

    conv_out, psum, psq = pl.pallas_call(
        _conv_stats_kernel,
        out_shape=(
            jax.ShapeDtypeStruct((M_p, Cout_p), jnp.bfloat16),
            jax.ShapeDtypeStruct((n_par * SUBLANE, Cout_p), jnp.float32),
            jax.ShapeDtypeStruct((n_par * SUBLANE, Cout_p), jnp.float32),
        ),
        grid_spec=pltpu.PrefetchScalarGridSpec(
            num_scalar_prefetch=0,
            grid=(n_par, n_inner),
            in_specs=[
                pl.BlockSpec((tm_eff, K_p), lambda p, i: (p * n_inner + i, 0)),
                pl.BlockSpec((K_p, Cout_p), lambda p, i: (0, 0)),
            ],
            out_specs=[
                pl.BlockSpec((tm_eff, Cout_p), lambda p, i: (p * n_inner + i, 0)),
                pl.BlockSpec((SUBLANE, Cout_p), lambda p, i: (p, 0)),
                pl.BlockSpec((SUBLANE, Cout_p), lambda p, i: (p, 0)),
            ],
        ),
        compiler_params=pltpu.CompilerParams(
            dimension_semantics=("parallel", "arbitrary"),
            vmem_limit_bytes=48 * 1024 * 1024,
        ),
        cost_estimate=cost,
    )(patches, w_mat)

    # --- scalar glue: fold training-mode BN (biased var) into scale/bias ---
    # (zero-padded M rows / K cols / Cout cols contribute exactly zero sums)
    ch_sum = jnp.sum(psum.reshape(n_par, SUBLANE, Cout_p)[:, 0, :], axis=0)[:Cout]
    ch_sq = jnp.sum(psq.reshape(n_par, SUBLANE, Cout_p)[:, 0, :], axis=0)[:Cout]
    mean = ch_sum / M
    var = jnp.maximum(ch_sq / M - mean * mean, 0.0)   # guard fp32 cancellation
    scale = gamma.astype(jnp.float32) / jnp.sqrt(var + EPS)
    bias = beta.astype(jnp.float32) - mean * scale
    scale_p = jnp.zeros((1, Cout_p), jnp.float32).at[0, :Cout].set(scale)
    bias_p = jnp.zeros((1, Cout_p), jnp.float32).at[0, :Cout].set(bias)

    # Kernel-2 row tile: grow (power-of-two multiples of tm_eff) up to 2048
    # rows while still dividing M_p.
    tm2 = tm_eff
    while tm2 * 2 <= min(M_p, 2048) and M_p % (tm2 * 2) == 0:
        tm2 *= 2

    out_p = pl.pallas_call(
        _bn_lrelu_kernel,
        out_shape=jax.ShapeDtypeStruct((M_p, Cout_p), jnp.bfloat16),
        grid_spec=pltpu.PrefetchScalarGridSpec(
            num_scalar_prefetch=0,
            grid=(M_p // tm2,),
            in_specs=[
                pl.BlockSpec((tm2, Cout_p), lambda i: (i, 0)),
                pl.BlockSpec((1, Cout_p), lambda i: (0, 0)),
                pl.BlockSpec((1, Cout_p), lambda i: (0, 0)),
            ],
            out_specs=pl.BlockSpec((tm2, Cout_p), lambda i: (i, 0)),
        ),
        compiler_params=pltpu.CompilerParams(dimension_semantics=("parallel",)),
        input_output_aliases={0: 0},     # in-place over conv_out
    )(conv_out, scale_p, bias_p)

    out = out_p[:M, :Cout].reshape(N, Ho, Wo, Cout)
    return jnp.transpose(out, (0, 3, 1, 2)).astype(jnp.float32)   # back to NCHW


def reference_forward(x_nchw, weight_oihw, gamma, beta):
    x_pad = jnp.pad(x_nchw, ((0, 0), (0, 0), (PAD, PAD), (PAD, PAD)), mode="reflect")
    y = jax.lax.conv_general_dilated(
        x_pad, weight_oihw, window_strides=(STRIDE, STRIDE), padding="VALID",
        dimension_numbers=("NCHW", "OIHW", "NCHW"),
        precision=jax.lax.Precision.HIGHEST)
    mean = jnp.mean(y, axis=(0, 2, 3), keepdims=True)
    var = jnp.var(y, axis=(0, 2, 3), keepdims=True)       # biased, like PyTorch training BN
    z = (y - mean) / jnp.sqrt(var + EPS)
    z = z * gamma.reshape(1, -1, 1, 1) + beta.reshape(1, -1, 1, 1)
    return jnp.where(z >= 0, z, NEG_SLOPE * z)


if __name__ == "__main__":
    key = jax.random.PRNGKey(0)

    def run_case(N, Cin, H, W, Cout, k):
        k_x, k_w, k_g, k_b = jax.random.split(k, 4)
        x = jax.random.normal(k_x, (N, Cin, H, W), dtype=jnp.float32)
        weight = 0.1 * jax.random.normal(k_w, (Cout, Cin, KH, KW), dtype=jnp.float32)
        gamma = 1.0 + 0.1 * jax.random.normal(k_g, (Cout,), dtype=jnp.float32)
        beta = 0.1 * jax.random.normal(k_b, (Cout,), dtype=jnp.float32)

        out = jax.block_until_ready(cnn_block_forward(x, weight, gamma, beta))
        ref = reference_forward(x, weight, gamma, beta)
        assert out.shape == (N, Cout, H // 2, W // 2), out.shape
        err = float(jnp.max(jnp.abs(out - ref)))
        # bf16 patch/weight/activation storage -> bf16-level tolerance.
        assert jnp.allclose(out, ref, rtol=3e-2, atol=3e-2), err

    k1, k2 = jax.random.split(key)
    run_case(2, 4, 16, 16, 8, k1)    # small shapes implied by the module
    run_case(2, 8, 24, 24, 16, k2)   # exercises M padding + 2-slice parallel stats
    print("KERNEL_OK")
</pallas_src>

<mosaic_0001>
module attributes {stable_mosaic.version = 11 : i64} {
  func.func @_conv_stats_kernel(%arg0: i32, %arg1: i32, %arg2: memref<128x128xbf16, #tpu.memory_space<vmem>>, %arg3: memref<128x128xbf16, #tpu.memory_space<vmem>>, %arg4: memref<128x128xbf16, #tpu.memory_space<vmem>>, %arg5: memref<8x128xf32, #tpu.memory_space<vmem>>, %arg6: memref<8x128xf32, #tpu.memory_space<vmem>>) attributes {dimension_semantics = [#tpu.dimension_semantics<parallel>, #tpu.dimension_semantics<arbitrary>], iteration_bounds = array<i64: 1, 1>, scalar_prefetch = 0 : i64, scratch_operands = 0 : i64, tpu.core_type = #tpu.core_type<tc>, window_params = [{transform_indices = @transform_0, window_bounds = array<i64: 128, 128>}, {pipeline_mode = #tpu.pipeline_mode<synchronous>, transform_indices = @transform_1, window_bounds = array<i64: 128, 128>}, {transform_indices = @transform_2, window_bounds = array<i64: 128, 128>}, {transform_indices = @transform_3, window_bounds = array<i64: 8, 128>}, {transform_indices = @transform_4, window_bounds = array<i64: 8, 128>}]} {
    %c0 = arith.constant 0 : index
    %c0_0 = arith.constant 0 : index
    %0 = vector.load %arg2[%c0, %c0_0] : memref<128x128xbf16, #tpu.memory_space<vmem>>, vector<128x128xbf16>
    %c0_1 = arith.constant 0 : index
    %c0_2 = arith.constant 0 : index
    %1 = vector.load %arg3[%c0_1, %c0_2] : memref<128x128xbf16, #tpu.memory_space<vmem>>, vector<128x128xbf16>
    %cst = arith.constant dense<0.000000e+00> : vector<128x128xf32>
    %2 = tpu.matmul %0, %1, %cst {dimension_numbers = #tpu.dot_dimension_numbers<[1], [0], [0], [1], [0, 0, 1, 1], [], []>} : vector<128x128xbf16>, vector<128x128xbf16>, vector<128x128xf32> -> vector<128x128xf32>
    %3 = arith.truncf %2 : vector<128x128xf32> to vector<128x128xbf16>
    %c0_3 = arith.constant 0 : index
    %c0_4 = arith.constant 0 : index
    %4 = vector.load %arg4[%c0_3, %c0_4] : memref<128x128xbf16, #tpu.memory_space<vmem>>, vector<128x128xbf16>
    tpu.vector_store %arg4[%c0_3, %c0_4], %3 {strides = array<i32>} : memref<128x128xbf16, #tpu.memory_space<vmem>>, vector<128x128xbf16>,
    %c0_i32 = arith.constant 0 : i32
    %5 = arith.cmpi eq, %arg1, %c0_i32 : i32
    %6 = arith.extui %5 : i1 to i32
    %c0_i32_5 = arith.constant 0 : i32
    %7 = arith.cmpi ne, %6, %c0_i32_5 : i32
    scf.if %7 {
      %cst_16 = arith.constant 0.000000e+00 : f32
      %21 = vector.broadcast %cst_16 : f32 to vector<8x128xf32>
      %c0_17 = arith.constant 0 : index
      %c0_18 = arith.constant 0 : index
      %22 = vector.load %arg5[%c0_17, %c0_18] : memref<8x128xf32, #tpu.memory_space<vmem>>, vector<8x128xf32>
      tpu.vector_store %arg5[%c0_17, %c0_18], %21 {strides = array<i32>} : memref<8x128xf32, #tpu.memory_space<vmem>>, vector<8x128xf32>,
      %cst_19 = arith.constant 0.000000e+00 : f32
      %23 = vector.broadcast %cst_19 : f32 to vector<8x128xf32>
      %c0_20 = arith.constant 0 : index
      %c0_21 = arith.constant 0 : index
      %24 = vector.load %arg6[%c0_20, %c0_21] : memref<8x128xf32, #tpu.memory_space<vmem>>, vector<8x128xf32>
      tpu.vector_store %arg6[%c0_20, %c0_21], %23 {strides = array<i32>} : memref<8x128xf32, #tpu.memory_space<vmem>>, vector<8x128xf32>,
    } else {
    }
    %c0_6 = arith.constant 0 : index
    %c0_7 = arith.constant 0 : index
    %8 = vector.load %arg5[%c0_6, %c0_7] : memref<8x128xf32, #tpu.memory_space<vmem>>, vector<8x128xf32>
    %cst_8 = arith.constant dense<0.000000e+00> : vector<128xf32>
    %9 = vector.multi_reduction <add>, %2, %cst_8 [0] : vector<128x128xf32> to vector<128xf32>
    %10 = vector.shape_cast %9 : vector<128xf32> to vector<1x128xf32>
    %11 = vector.broadcast %10 : vector<1x128xf32> to vector<8x128xf32>
    %12 = arith.addf %8, %11 : vector<8x128xf32>
    %c0_9 = arith.constant 0 : index
    %c0_10 = arith.constant 0 : index
    %13 = vector.load %arg5[%c0_9, %c0_10] : memref<8x128xf32, #tpu.memory_space<vmem>>, vector<8x128xf32>
    tpu.vector_store %arg5[%c0_9, %c0_10], %12 {strides = array<i32>} : memref<8x128xf32, #tpu.memory_space<vmem>>, vector<8x128xf32>,
    %c0_11 = arith.constant 0 : index
    %c0_12 = arith.constant 0 : index
    %14 = vector.load %arg6[%c0_11, %c0_12] : memref<8x128xf32, #tpu.memory_space<vmem>>, vector<8x128xf32>
    %15 = arith.mulf %2, %2 : vector<128x128xf32>
    %cst_13 = arith.constant dense<0.000000e+00> : vector<128xf32>
    %16 = vector.multi_reduction <add>, %15, %cst_13 [0] : vector<128x128xf32> to vector<128xf32>
    %17 = vector.shape_cast %16 : vector<128xf32> to vector<1x128xf32>
    %18 = vector.broadcast %17 : vector<1x128xf32> to vector<8x128xf32>
    %19 = arith.addf %14, %18 : vector<8x128xf32>
    %c0_14 = arith.constant 0 : index
    %c0_15 = arith.constant 0 : index
    %20 = vector.load %arg6[%c0_14, %c0_15] : memref<8x128xf32, #tpu.memory_space<vmem>>, vector<8x128xf32>
    tpu.vector_store %arg6[%c0_14, %c0_15], %19 {strides = array<i32>} : memref<8x128xf32, #tpu.memory_space<vmem>>, vector<8x128xf32>,
    return
  }
  func.func @transform_0(%arg0: i32, %arg1: i32) -> (i32, i32) {
    %c1_i32 = arith.constant 1 : i32
    %0 = arith.muli %arg0, %c1_i32 : i32
    %1 = arith.addi %0, %arg1 : i32
    %c0_i32 = arith.constant 0 : i32
    %c0_i32_0 = arith.constant 0 : i32
    return %1, %c0_i32 : i32, i32
  }
  func.func @transform_1(%arg0: i32, %arg1: i32) -> (i32, i32) {
    %c0_i32 = arith.constant 0 : i32
    %c0_i32_0 = arith.constant 0 : i32
    %c0_i32_1 = arith.constant 0 : i32
    return %c0_i32, %c0_i32_0 : i32, i32
  }
  func.func @transform_2(%arg0: i32, %arg1: i32) -> (i32, i32) {
    %c1_i32 = arith.constant 1 : i32
    %0 = arith.muli %arg0, %c1_i32 : i32
    %1 = arith.addi %0, %arg1 : i32
    %c0_i32 = arith.constant 0 : i32
    %c0_i32_0 = arith.constant 0 : i32
    return %1, %c0_i32 : i32, i32
  }
  func.func @transform_3(%arg0: i32, %arg1: i32) -> (i32, i32) {
    %c0_i32 = arith.constant 0 : i32
    %c0_i32_0 = arith.constant 0 : i32
    return %arg0, %c0_i32 : i32, i32
  }
  func.func @transform_4(%arg0: i32, %arg1: i32) -> (i32, i32) {
    %c0_i32 = arith.constant 0 : i32
    %c0_i32_0 = arith.constant 0 : i32
    return %arg0, %c0_i32 : i32, i32
  }
}

module attributes {stable_mosaic.version = 11 : i64} {
  func.func @_bn_lrelu_kernel(%arg0: i32, %arg1: memref<128x128xbf16, #tpu.memory_space<vmem>>, %arg2: memref<1x128xf32, #tpu.memory_space<vmem>>, %arg3: memref<1x128xf32, #tpu.memory_space<vmem>>, %arg4: memref<128x128xbf16, #tpu.memory_space<vmem>>) attributes {dimension_semantics = [#tpu.dimension_semantics<parallel>], iteration_bounds = array<i64: 1>, scalar_prefetch = 0 : i64, scratch_operands = 0 : i64, tpu.core_type = #tpu.core_type<tc>, window_params = [{transform_indices = @transform_0, window_bounds = array<i64: 128, 128>}, {pipeline_mode = #tpu.pipeline_mode<synchronous>, transform_indices = @transform_1, window_bounds = array<i64: 1, 128>}, {pipeline_mode = #tpu.pipeline_mode<synchronous>, transform_indices = @transform_2, window_bounds = array<i64: 1, 128>}, {transform_indices = @transform_3, window_bounds = array<i64: 128, 128>}]} {
    %c0 = arith.constant 0 : index
    %c0_0 = arith.constant 0 : index
    %0 = vector.load %arg1[%c0, %c0_0] : memref<128x128xbf16, #tpu.memory_space<vmem>>, vector<128x128xbf16>
    %1 = arith.extf %0 : vector<128x128xbf16> to vector<128x128xf32>
    %c0_1 = arith.constant 0 : index
    %c0_2 = arith.constant 0 : index
    %2 = vector.load %arg2[%c0_1, %c0_2] : memref<1x128xf32, #tpu.memory_space<vmem>>, vector<1x128xf32>
    %3 = vector.broadcast %2 : vector<1x128xf32> to vector<128x128xf32>
    %4 = arith.mulf %1, %3 : vector<128x128xf32>
    %c0_3 = arith.constant 0 : index
    %c0_4 = arith.constant 0 : index
    %5 = vector.load %arg3[%c0_3, %c0_4] : memref<1x128xf32, #tpu.memory_space<vmem>>, vector<1x128xf32>
    %6 = vector.broadcast %5 : vector<1x128xf32> to vector<128x128xf32>
    %7 = arith.addf %4, %6 : vector<128x128xf32>
    %cst = arith.constant 0.000000e+00 : f32
    %8 = vector.broadcast %cst : f32 to vector<128x128xf32>
    %9 = arith.cmpf oge, %7, %8 : vector<128x128xf32>
    %cst_5 = arith.constant 2.000000e-01 : f32
    %10 = vector.broadcast %cst_5 : f32 to vector<128x128xf32>
    %11 = arith.mulf %10, %7 : vector<128x128xf32>
    %12 = arith.select %9, %7, %11 : vector<128x128xi1>, vector<128x128xf32>
    %13 = arith.truncf %12 : vector<128x128xf32> to vector<128x128xbf16>
    %c0_6 = arith.constant 0 : index
    %c0_7 = arith.constant 0 : index
    %14 = vector.load %arg4[%c0_6, %c0_7] : memref<128x128xbf16, #tpu.memory_space<vmem>>, vector<128x128xbf16>
    tpu.vector_store %arg4[%c0_6, %c0_7], %13 {strides = array<i32>} : memref<128x128xbf16, #tpu.memory_space<vmem>>, vector<128x128xbf16>,
    return
  }
  func.func @transform_0(%arg0: i32) -> (i32, i32) {
    %c0_i32 = arith.constant 0 : i32
    %c0_i32_0 = arith.constant 0 : i32
    return %arg0, %c0_i32 : i32, i32
  }
  func.func @transform_1(%arg0: i32) -> (i32, i32) {
    %c0_i32 = arith.constant 0 : i32
    %c0_i32_0 = arith.constant 0 : i32
    %c0_i32_1 = arith.constant 0 : i32
    return %c0_i32, %c0_i32_0 : i32, i32
  }
  func.func @transform_2(%arg0: i32) -> (i32, i32) {
    %c0_i32 = arith.constant 0 : i32
    %c0_i32_0 = arith.constant 0 : i32
    %c0_i32_1 = arith.constant 0 : i32
    return %c0_i32, %c0_i32_0 : i32, i32
  }
  func.func @transform_3(%arg0: i32) -> (i32, i32) {
    %c0_i32 = arith.constant 0 : i32
    %c0_i32_0 = arith.constant 0 : i32
    return %arg0, %c0_i32 : i32, i32
  }
}

</mosaic_0001>

<bundles_post_ra>
// kernel: cnn_block_forward.3
= control target key start
LH: loop header
LB: loop body
LE: loop exit
PB: predicated region body
PF: predicated region fallthrough
CT: control target
= control target key end

     0   :  { %s455_s0 = inlined_call_operand.vmem [shape: bf16[128,128], index: 0, kind: input, shape index: {}, may-alias: {0,3}]   ;;  %s456_s1 = inlined_call_operand.vmem [shape: f32[1,128], index: 1, kind: input, shape index: {}]   ;;  %s457_s2 = inlined_call_operand.vmem [shape: f32[1,128], index: 2, kind: input, shape index: {}]   ;;  %s458_s3 = inlined_call_operand.vmem [shape: bf16[128,128], index: 3, kind: output, shape index: {}, may-alias: {0,3}]  }
   0x1   :  { %v259_v0 = vld [vmem:[%s455_s0] sm:$0xff]   ;;  %v330_v4 = vld [vmem:[%s455_s0 + $0x8] sm:$0xff]   ;;  %v331_v5 = vld [vmem:[%s455_s0 + $0x10] sm:$0xff]  }
   0x2   :  { %v370_v1 = vld [vmem:[%s456_s1] ss:$0 sm:$0xff]  ;;  %v260_v2 = vunpack.c.l.bf16 %v259_v0  ;;  %v261_v3 = vunpack.c.h.bf16 %v259_v0  ;;  %v332_v6 = vld [vmem:[%s455_s0 + $0x18] sm:$0xff]   ;;  %v264_v8 = vunpack.c.l.bf16 %v330_v4  ;;  %v265_v9 = vunpack.c.h.bf16 %v330_v4  ;;  %v334_v35 = vld [vmem:[%s455_s0 + $0x28] sm:$0xff]  }
   0x3   :  { %v384_v7 = vld [vmem:[%s457_s2] ss:$0 sm:$0xff]  ;;  %v268_v10 = vunpack.c.l.bf16 %v331_v5  ;;  %v269_v11 = vunpack.c.h.bf16 %v331_v5  ;;  %v272_v14 = vunpack.c.l.bf16 %v332_v6  ;;  %v273_v15 = vunpack.c.h.bf16 %v332_v6 }
   0x4   :  { %v53_v12 = vmul.f32 %v260_v2, %v370_v1  ;;  %v54_v13 = vmul.f32 %v261_v3, %v370_v1  ;;  %v55_v16 = vmul.f32 %v264_v8, %v370_v1  ;;  %v56_v17 = vmul.f32 %v265_v9, %v370_v1  ;;  %v333_v34 = vld [vmem:[%s455_s0 + $0x20] sm:$0xff]  }
   0x5   :  { %v57_v18 = vmul.f32 %v268_v10, %v370_v1  ;;  %v58_v19 = vmul.f32 %v269_v11, %v370_v1  ;;  %v59_v22 = vmul.f32 %v272_v14, %v370_v1  ;;  %v60_v23 = vmul.f32 %v273_v15, %v370_v1 }
   0x6   :  { %v76_v20 = vadd.f32 %v384_v7, %v53_v12  ;;  %v77_v21 = vadd.f32 %v384_v7, %v54_v13  ;;  %v78_v24 = vadd.f32 %v384_v7, %v55_v16  ;;  %v79_v25 = vadd.f32 %v384_v7, %v56_v17 }
   0x7   :  { %v80_v26 = vadd.f32 %v384_v7, %v57_v18  ;;  %v81_v27 = vadd.f32 %v384_v7, %v58_v19  ;;  %v82_v42 = vadd.f32 %v384_v7, %v59_v22  ;;  %v83_v43 = vadd.f32 %v384_v7, %v60_v23 }
   0x8   :  { %vm92_vm0 = vcmp.ge.f32.partialorder %v76_v20, 0.0  ;;  %vm93_vm1 = vcmp.ge.f32.partialorder %v77_v21, 0.0  ;;  %v108_v28 = vmul.f32 0.2, %v76_v20  ;;  %v109_v29 = vmul.f32 0.2, %v77_v21 }
   0x9   :  { %vm94_vm2 = vcmp.ge.f32.partialorder %v78_v24, 0.0  ;;  %vm95_vm3 = vcmp.ge.f32.partialorder %v79_v25, 0.0  ;;  %v110_v30 = vmul.f32 0.2, %v78_v24  ;;  %v111_v31 = vmul.f32 0.2, %v79_v25 }
   0xa   :  { %v124_v32 = vsel %vm92_vm0, %v76_v20, %v108_v28  ;;  %v125_v33 = vsel %vm93_vm1, %v77_v21, %v109_v29  ;;  %vm96_vm4 = vcmp.ge.f32.partialorder %v80_v26, 0.0  ;;  %vm97_vm5 = vcmp.ge.f32.partialorder %v81_v27, 0.0 }
   0xb   :  { %v293_v36 = vpack.c.bf16 %v125_v33, %v124_v32  ;;  %v126_v37 = vsel %vm94_vm2, %v78_v24, %v110_v30  ;;  %v127_v38 = vsel %vm95_vm3, %v79_v25, %v111_v31  ;;  %v112_v39 = vmul.f32 0.2, %v80_v26 }
   0xc   :  { %v298_v40 = vpack.c.bf16 %v127_v38, %v126_v37  ;;  %v113_v41 = vmul.f32 0.2, %v81_v27  ;;  %v276_v45 = vunpack.c.l.bf16 %v333_v34  ;;  %v277_v46 = vunpack.c.h.bf16 %v333_v34 }
   0xd   :  { %294 = vst [vmem:[%s458_s3] sm:$0xff] %v293_v36   ;;  %v128_v44 = vsel %vm96_vm4, %v80_v26, %v112_v39  ;;  %v280_v47 = vunpack.c.l.bf16 %v334_v35  ;;  %vm98_vm6 = vcmp.ge.f32.partialorder %v82_v42, 0.0  ;;  %vm99_vm7 = vcmp.ge.f32.partialorder %v83_v43, 0.0 }
   0xe   :  { %v129_v49 = vsel %vm97_vm5, %v81_v27, %v113_v41  ;;  %v114_v50 = vmul.f32 0.2, %v82_v42  ;;  %v115_v52 = vmul.f32 0.2, %v83_v43  ;;  %v61_v53 = vmul.f32 %v276_v45, %v370_v1 }
   0xf   :  { %v303_v51 = vpack.c.bf16 %v129_v49, %v128_v44  ;;  %v62_v54 = vmul.f32 %v277_v46, %v370_v1  ;;  %v281_v56 = vunpack.c.h.bf16 %v334_v35  ;;  %v63_v57 = vmul.f32 %v280_v47, %v370_v1 }
  0x10   :  { %v130_v55 = vsel %vm98_vm6, %v82_v42, %v114_v50  ;;  %v131_v59 = vsel %vm99_vm7, %v83_v43, %v115_v52  ;;  %v84_v60 = vadd.f32 %v384_v7, %v61_v53 }
  0x11   :  { %v85_v61 = vadd.f32 %v384_v7, %v62_v54  ;;  %v308_v63 = vpack.c.bf16 %v131_v59, %v130_v55  ;;  %v64_v0 = vmul.f32 %v281_v56, %v370_v1  ;;  %v86_v2 = vadd.f32 %v384_v7, %v63_v57 }
  0x12   :  { %vm100_vm8 = vcmp.ge.f32.partialorder %v84_v60, 0.0  ;;  %v116_v5 = vmul.f32 0.2, %v84_v60 }
  0x13   :  { %vm101_vm9 = vcmp.ge.f32.partialorder %v85_v61, 0.0  ;;  %v117_v6 = vmul.f32 0.2, %v85_v61  ;;  %v87_v8 = vadd.f32 %v384_v7, %v64_v0  ;;  %vm102_vm10 = vcmp.ge.f32.partialorder %v86_v2, 0.0 }
  0x14   :  { %v335_v48 = vld [vmem:[%s455_s0 + $0x30] sm:$0xff]   ;;  %v118_v9 = vmul.f32 0.2, %v86_v2  ;;  %v132_v11 = vsel %vm100_vm8, %v84_v60, %v116_v5 }
  0x15   :  { %337 = vst [vmem:[%s458_s3 + $0x8] sm:$0xff] %v298_v40   ;;  %v284_v58 = vunpack.c.l.bf16 %v335_v48  ;;  %338 = vst [vmem:[%s458_s3 + $0x10] sm:$0xff] %v303_v51   ;;  %v285_v62 = vunpack.c.h.bf16 %v335_v48  ;;  %v133_v12 = vsel %vm101_vm9, %v85_v61, %v117_v6  ;;  %vm103_vm11 = vcmp.ge.f32.partialorder %v87_v8, 0.0 }
  0x16   :  { %v313_v15 = vpack.c.bf16 %v133_v12, %v132_v11  ;;  %v119_v16 = vmul.f32 0.2, %v87_v8  ;;  %v134_v17 = vsel %vm102_vm10, %v86_v2, %v118_v9 }
  0x17   :  { %v65_v3 = vmul.f32 %v284_v58, %v370_v1  ;;  %v66_v10 = vmul.f32 %v285_v62, %v370_v1 }
  0x18   :  { %v135_v21 = vsel %vm103_vm11, %v87_v8, %v119_v16 }
  0x19   :  { %v88_v13 = vadd.f32 %v384_v7, %v65_v3  ;;  %v89_v18 = vadd.f32 %v384_v7, %v66_v10  ;;  %v318_v23 = vpack.c.bf16 %v135_v21, %v134_v17 }
  0x1b   :  { %vm104_vm12 = vcmp.ge.f32.partialorder %v88_v13, 0.0  ;;  %v120_v19 = vmul.f32 0.2, %v88_v13  ;;  %vm105_vm13 = vcmp.ge.f32.partialorder %v89_v18, 0.0  ;;  %v121_v24 = vmul.f32 0.2, %v89_v18 }
  0x1c   :  { %v336_v4 = vld [vmem:[%s455_s0 + $0x38] sm:$0xff]  }
  0x1d   :  { %339 = vst [vmem:[%s458_s3 + $0x18] sm:$0xff] %v308_v63   ;;  %v288_v14 = vunpack.c.l.bf16 %v336_v4  ;;  %v289_v20 = vunpack.c.h.bf16 %v336_v4  ;;  %340 = vst [vmem:[%s458_s3 + $0x20] sm:$0xff] %v313_v15   ;;  %v136_v25 = vsel %vm104_vm12, %v88_v13, %v120_v19  ;;  %v137_v28 = vsel %vm105_vm13, %v89_v18, %v121_v24 }
  0x1e   :  { %341 = vst [vmem:[%s458_s3 + $0x28] sm:$0xff] %v318_v23   ;;  %v323_v29 = vpack.c.bf16 %v137_v28, %v136_v25 }
  0x1f   :  { %v67_v22 = vmul.f32 %v288_v14, %v370_v1  ;;  %v68_v26 = vmul.f32 %v289_v20, %v370_v1 }
  0x20   :  { %342 = vst [vmem:[%s458_s3 + $0x30] sm:$0xff] %v323_v29  }
  0x21   :  { %v90_v27 = vadd.f32 %v384_v7, %v67_v22  ;;  %v91_v30 = vadd.f32 %v384_v7, %v68_v26 }
  0x23   :  { %vm106_vm14 = vcmp.ge.f32.partialorder %v90_v27, 0.0  ;;  %v122_v31 = vmul.f32 0.2, %v90_v27  ;;  %vm107_vm15 = vcmp.ge.f32.partialorder %v91_v30, 0.0  ;;  %v123_v32 = vmul.f32 0.2, %v91_v30 }
  0x25   :  { %v138_v33 = vsel %vm106_vm14, %v90_v27, %v122_v31  ;;  %v139_v1 = vsel %vm107_vm15, %v91_v30, %v123_v32 }
  0x26   :  { %v328_v34 = vpack.c.bf16 %v139_v1, %v138_v33 }
  0x28   :  { %343 = vst [vmem:[%s458_s3 + $0x38] sm:$0xff] %v328_v34  }

// kernel: cnn_block_forward.2
= control target key start
LH: loop header
LB: loop body
LE: loop exit
PB: predicated region body
PF: predicated region fallthrough
CT: control target
= control target key end

     0   :  { %s745_s1 = inlined_call_operand.vmem [shape: bf16[128,128], index: 1, kind: input, shape index: {}]   ;;  %s746_s0 = inlined_call_operand.vmem [shape: bf16[128,128], index: 0, kind: input, shape index: {}]   ;;  %s747_s2 = inlined_call_operand.vmem [shape: bf16[128,128], index: 2, kind: output, shape index: {0}]   ;;  %s748_s3 = inlined_call_operand.vmem [shape: f32[8,128], index: 3, kind: output, shape index: {1}]   ;;  %s749_s4 = inlined_call_operand.vmem [shape: f32[8,128], index: 4, kind: output, shape index: {2}]  }
   0x1   :  { %v626_v0 = vld [vmem:[%s745_s1] sm:$0xff]   ;;  %v627_v1 = vld [vmem:[%s745_s1 + $0x8] sm:$0xff]   ;;  %v628_v2 = vld [vmem:[%s745_s1 + $0x10] sm:$0xff]  }
   0x2   :  { %577 = vmatprep.subr.bf16.mxu0 %v626_v0  ;;  %609 = vmatprep.subr.bf16.mxu1 %v626_v0  ;;  %v629_v3 = vld [vmem:[%s745_s1 + $0x18] sm:$0xff]   ;;  %v634_v4 = vld [vmem:[%s746_s0] sm:$0xff]   ;;  %v631_v7 = vld [vmem:[%s745_s1 + $0x28] sm:$0xff]  }
   0x3   :  { %578 = vmatpush3.bf16.msra.mxu0 %v626_v0  ;;  %617 = vmatpush3.bf16.msra.mxu1 %v626_v0  ;;  %v630_v5 = vld [vmem:[%s745_s1 + $0x20] sm:$0xff]   ;;  %v632_v8 = vld [vmem:[%s745_s1 + $0x30] sm:$0xff]   ;;  %v633_v9 = vld [vmem:[%s745_s1 + $0x38] sm:$0xff]  }
   0x4   :  { %579 = vmatprep.subr.bf16.mxu0 %v627_v1  ;;  %610 = vmatprep.subr.bf16.mxu1 %v627_v1  ;;  %v638_v6 = vld [vmem:[%s746_s0 + $0x20] sm:$0xff]   ;;  %v635_v10 = vld [vmem:[%s746_s0 + $0x8] sm:$0xff]   ;;  %v636_v12 = vld [vmem:[%s746_s0 + $0x10] sm:$0xff]  }
   0x5   :  { %593 = vmatprep.mubr.bf16.mxu0 %v634_v4  ;;  %601 = vmatprep.mubr.bf16.mxu1 %v638_v6  ;;  %v639_v11 = vld [vmem:[%s746_s0 + $0x28] sm:$0xff]   ;;  %v640_v13 = vld [vmem:[%s746_s0 + $0x30] sm:$0xff]   ;;  %v637_v14 = vld [vmem:[%s746_s0 + $0x18] sm:$0xff]  }
   0x6   :  { %v641_v15 = vld [vmem:[%s746_s0 + $0x38] sm:$0xff]  }
   0x7   :  { %580 = vmatpush3.bf16.msra.mxu0 %v627_v1  ;;  %618 = vmatpush3.bf16.msra.mxu1 %v627_v1 }
   0x8   :  { %581 = vmatprep.subr.bf16.mxu0 %v628_v2  ;;  %611 = vmatprep.subr.bf16.mxu1 %v628_v2 }
   0xb   :  { %582 = vmatpush3.bf16.msra.mxu0 %v628_v2  ;;  %619 = vmatpush3.bf16.msra.mxu1 %v628_v2 }
   0xc   :  { %583 = vmatprep.subr.bf16.mxu0 %v629_v3  ;;  %612 = vmatprep.subr.bf16.mxu1 %v629_v3 }
   0xf   :  { %584 = vmatpush3.bf16.msra.mxu0 %v629_v3  ;;  %620 = vmatpush3.bf16.msra.mxu1 %v629_v3 }
  0x10   :  { %585 = vmatprep.subr.bf16.mxu0 %v630_v5  ;;  %613 = vmatprep.subr.bf16.mxu1 %v630_v5 }
  0x13   :  { %586 = vmatpush3.bf16.msra.mxu0 %v630_v5  ;;  %621 = vmatpush3.bf16.msra.mxu1 %v630_v5 }
  0x14   :  { %587 = vmatprep.subr.bf16.mxu0 %v631_v7  ;;  %614 = vmatprep.subr.bf16.mxu1 %v631_v7 }
  0x17   :  { %588 = vmatpush3.bf16.msra.mxu0 %v631_v7  ;;  %622 = vmatpush3.bf16.msra.mxu1 %v631_v7 }
  0x18   :  { %589 = vmatprep.subr.bf16.mxu0 %v632_v8  ;;  %615 = vmatprep.subr.bf16.mxu1 %v632_v8 }
  0x1b   :  { %590 = vmatpush3.bf16.msra.mxu0 %v632_v8  ;;  %623 = vmatpush3.bf16.msra.mxu1 %v632_v8 }
  0x1c   :  { %591 = vmatprep.subr.bf16.mxu0 %v633_v9  ;;  %616 = vmatprep.subr.bf16.mxu1 %v633_v9 }
  0x1f   :  { %592 = vmatpush3.bf16.msra.mxu0 %v633_v9  ;;  %624 = vmatpush3.bf16.msra.mxu1 %v633_v9 }
  0x22   :  { %594 = vmatmul.mubr.bf16.vlgmr.msra.gmra.mrb[0].mxu0 %v635_v10  ;;  %602 = vmatmul.mubr.bf16.vlgmr.msra.gmra.mrb[0].mxu1 %v639_v11 }
  0x23   :  { %597 = vmatprep.mubr.bf16.mxu0 %v636_v12  ;;  %605 = vmatprep.mubr.bf16.mxu1 %v640_v13 }
  0x2a   :  { %598 = vmatmul.mubr.bf16.gmra.mrb[4].mxu0 %v637_v14  ;;  %606 = vmatmul.mubr.bf16.gmra.mrb[4].mxu1 %v641_v15 }
  0xf5   :  { %v595_v16 = vpop.f32.mrb[0].mxu0  ;;  %v603_v17 = vpop.f32.mrb[0].mxu1 }
  0xf6   :  { %v213_v18 = vpop.f32.mrb[1].mxu0  ;;  %v245_v19 = vpop.f32.mrb[1].mxu1  ;;  %v389_v31 = vmul.f32 %v595_v16, %v595_v16  ;;  %v397_v3 = vmul.f32 %v603_v17, %v603_v17 }
  0xf7   :  { %v596_v20 = vpop.f32.mrb[2].mxu0  ;;  %v604_v21 = vpop.f32.mrb[2].mxu1  ;;  %v387_v22 = vmul.f32 %v213_v18, %v213_v18  ;;  %v395_v61 = vmul.f32 %v245_v19, %v245_v19 }
  0xf8   :  { %v522_v23 = vpack.c.bf16 %v596_v20, %v595_v16  ;;  %v216_v24 = vpop.f32.mrb[3].mxu0  ;;  %v542_v25 = vpack.c.bf16 %v604_v21, %v603_v17  ;;  %v248_v26 = vpop.f32.mrb[3].mxu1  ;;  %v390_v34 = vmul.f32 %v596_v20, %v596_v20  ;;  %v398_v6 = vmul.f32 %v604_v21, %v604_v21 }
  0xf9   :  { %v517_v27 = vpack.c.bf16 %v216_v24, %v213_v18  ;;  %v363_v28 = vadd.f32 %v216_v24, %v213_v18  ;;  %v388_v29 = vmul.f32 %v216_v24, %v216_v24  ;;  %v537_v30 = vpack.c.bf16 %v248_v26, %v245_v19 }
  0xfa   :  { %554 = vst [vmem:[%s747_s2 + $0x8] sm:$0xff] %v522_v23   ;;  %558 = vst [vmem:[%s747_s2 + $0x28] sm:$0xff] %v542_v25   ;;  %v396_v2 = vmul.f32 %v248_v26, %v248_v26 }
  0xfb   :  { %518 = vst [vmem:[%s747_s2] sm:$0xff] %v517_v27   ;;  %v364_v32 = vadd.f32 %v595_v16, %v363_v28  ;;  %v403_v33 = vadd.f32 %v388_v29, %v387_v22  ;;  %557 = vst [vmem:[%s747_s2 + $0x20] sm:$0xff] %v537_v30  }
  0xfd   :  { %v404_v35 = vadd.f32 %v403_v33, %v389_v31  ;;  %v599_v36 = vpop.f32.mrb[4].mxu0  ;;  %v365_v37 = vadd.f32 %v596_v20, %v364_v32  ;;  %v607_v38 = vpop.f32.mrb[4].mxu1 }
  0xfe   :  { %v229_v39 = vpop.f32.mrb[5].mxu0  ;;  %v261_v40 = vpop.f32.mrb[5].mxu1  ;;  %v393_v55 = vmul.f32 %v599_v36, %v599_v36  ;;  %v401_v15 = vmul.f32 %v607_v38, %v607_v38 }
  0xff   :  { %v366_v41 = vadd.f32 %v365_v37, %v229_v39  ;;  %v391_v42 = vmul.f32 %v229_v39, %v229_v39  ;;  %v405_v43 = vadd.f32 %v404_v35, %v390_v34  ;;  %v600_v44 = vpop.f32.mrb[6].mxu0  ;;  %v608_v45 = vpop.f32.mrb[6].mxu1  ;;  %v399_v9 = vmul.f32 %v261_v40, %v261_v40 }
 0x100   :  { %v532_v46 = vpack.c.bf16 %v600_v44, %v599_v36  ;;  %v232_v47 = vpop.f32.mrb[7].mxu0  ;;  %v552_v48 = vpack.c.bf16 %v608_v45, %v607_v38  ;;  %v264_v49 = vpop.f32.mrb[7].mxu1  ;;  %v394_v58 = vmul.f32 %v600_v44, %v600_v44 }
 0x101   :  { %v406_v50 = vadd.f32 %v405_v43, %v391_v42  ;;  %v527_v51 = vpack.c.bf16 %v232_v47, %v229_v39  ;;  %v367_v52 = vadd.f32 %v366_v41, %v232_v47  ;;  %v392_v53 = vmul.f32 %v232_v47, %v232_v47 }
 0x102   :  { %556 = vst [vmem:[%s747_s2 + $0x18] sm:$0xff] %v532_v46   ;;  %560 = vst [vmem:[%s747_s2 + $0x38] sm:$0xff] %v552_v48   ;;  %v547_v54 = vpack.c.bf16 %v264_v49, %v261_v40  ;;  %v400_v14 = vmul.f32 %v264_v49, %v264_v49 }
 0x103   :  { %555 = vst [vmem:[%s747_s2 + $0x10] sm:$0xff] %v527_v51   ;;  %v368_v56 = vadd.f32 %v599_v36, %v367_v52  ;;  %v407_v57 = vadd.f32 %v406_v50, %v392_v53 }
 0x104   :  { %559 = vst [vmem:[%s747_s2 + $0x30] sm:$0xff] %v547_v54  }
 0x105   :  { %v408_v59 = vadd.f32 %v407_v57, %v393_v55  ;;  %v369_v60 = vadd.f32 %v600_v44, %v368_v56 }
 0x107   :  { %v370_v62 = vadd.f32 %v369_v60, %v245_v19  ;;  %v409_v63 = vadd.f32 %v408_v59, %v394_v58  ;;  %v402_v19 = vmul.f32 %v608_v45, %v608_v45 }
 0x109   :  { %v410_v0 = vadd.f32 %v409_v63, %v395_v61  ;;  %v371_v1 = vadd.f32 %v370_v62, %v248_v26 }
 0x10b   :  { %v372_v4 = vadd.f32 %v603_v17, %v371_v1  ;;  %v411_v5 = vadd.f32 %v410_v0, %v396_v2 }
 0x10d   :  { %v412_v7 = vadd.f32 %v411_v5, %v397_v3  ;;  %v373_v8 = vadd.f32 %v604_v21, %v372_v4 }
 0x10f   :  { %v374_v10 = vadd.f32 %v373_v8, %v261_v40  ;;  %v413_v11 = vadd.f32 %v412_v7, %v398_v6 }
 0x111   :  { %v414_v12 = vadd.f32 %v413_v11, %v399_v9  ;;  %v375_v13 = vadd.f32 %v374_v10, %v264_v49 }
 0x113   :  { %v376_v16 = vadd.f32 %v607_v38, %v375_v13  ;;  %v415_v18 = vadd.f32 %v414_v12, %v400_v14 }
 0x115   :  { %v377_v20 = vadd.f32 %v608_v45, %v376_v16  ;;  %v416_v22 = vadd.f32 %v415_v18, %v401_v15 }
 0x117   :  { %v378_v23 = vrot.slane %v377_v20, 4  ;;  %v417_v24 = vadd.f32 %v416_v22, %v402_v19 }
 0x119   :  { %v379_v25 = vadd.f32 %v378_v23, %v377_v20  ;;  %v418_v17 = vrot.slane %v417_v24, 4 }
 0x11b   :  { %v380_v26 = vrot.slane %v379_v25, 2  ;;  %v419_v27 = vadd.f32 %v418_v17, %v417_v24 }
 0x11d   :  { %v381_v28 = vadd.f32 %v380_v26, %v379_v25  ;;  %v420_v21 = vrot.slane %v419_v27, 2 }
 0x11f   :  { %v382_v29 = vrot.slane %v381_v28, 1  ;;  %v421_v30 = vadd.f32 %v420_v21, %v419_v27 }
 0x121   :  { %v383_v31 = vadd.f32 %v382_v29, %v381_v28  ;;  %v422_v32 = vrot.slane %v421_v30, 1 }
 0x123   :  { %v423_v33 = vadd.f32 %v422_v32, %v421_v30  ;;  %385 = vst [vmem:[%s748_s3] sm:$0xff] %v383_v31 }
 0x125   :  { %425 = vst [vmem:[%s749_s4] sm:$0xff] %v423_v33 }

</bundles_post_ra>
